<compile_context>
chip_gen: v7x
topology: tpu7x:2x2x1
jax: 0.10.0
libtpu: 0.0.40
codegen_flags: <defaults>
</compile_context>

<pallas_src>
import jax
import jax.numpy as jnp
from jax import lax
from jax.experimental import pallas as pl
from jax.experimental.pallas import tpu as pltpu

IN_FEATURES = 100
OUT_FEATURES = 20
DROP_P = 0.5
N_PAD = 128                      # lane-dense output width
TM_MAX = 256                     # batch-tile rows (fits MXU on v6e/v7x; fine on v5e)
KEEP_THRESHOLD = int(DROP_P * (1 << 32))   # keep iff bits >= threshold  (P = 1 - p)


def _round_up(x, m):
    return ((x + m - 1) // m) * m


def dropout_fc_kernel(x_ref, w_ref, b_ref, bits_ref, o_ref):
    # x_ref:    (TM, 100)   activations tile
    # w_ref:    (128, 100)  weight, native (N, K) layout, N padded to 128,
    #                       already scaled by 1/(1-p)
    # b_ref:    (1, 128)    bias (padded, scaled)
    # bits_ref: (TM, 128)   raw uint32 random bits for this tile
    # o_ref:    (TM, 128)   lane-dense output tile
    y = lax.dot_general(
        x_ref[...], w_ref[...],
        dimension_numbers=(((1,), (1,)), ((), ())),   # x @ W^T on the MXU
        preferred_element_type=jnp.float32,
    )
    y = y + b_ref[...]
    keep = bits_ref[...] >= jnp.uint32(KEEP_THRESHOLD)   # p = 0.5 integer threshold
    o_ref[...] = jnp.where(keep, y, 0.0).astype(o_ref.dtype)


def dropout_fc(x, weight, bias, key):
    """Forward of DropoutFC: dropout(Linear(x), p=0.5, training=True).

    x: (100,) or (B, 100) float32
    weight: (20, 100) float32, bias: (20,) float32
    key: jax PRNG key for the dropout mask
    """
    squeeze = (x.ndim == 1)
    xb = x.reshape(1, IN_FEATURES) if squeeze else x
    B = xb.shape[0]

    # Batch tiling: TM rows per grid step, batch padded to a multiple of TM.
    TM = min(TM_MAX, _round_up(B, 8))
    B_pad = _round_up(B, TM)
    if B_pad != B:
        xb = jnp.pad(xb, ((0, B_pad - B), (0, 0)))

    # Fold the 1/(1-p) dropout scale into the parameters; pad N to 128 lanes.
    scale = 1.0 / (1.0 - DROP_P)
    w_pad = jnp.zeros((N_PAD, IN_FEATURES), jnp.float32).at[:OUT_FEATURES, :].set(
        weight.astype(jnp.float32) * scale)
    b_pad = jnp.zeros((1, N_PAD), jnp.float32).at[0, :OUT_FEATURES].set(
        bias.astype(jnp.float32) * scale)

    # Host-side random bits (independent per element, hence per tile).
    bits = jax.random.bits(key, (B_pad, N_PAD), dtype=jnp.uint32)

    grid = (B_pad // TM,)
    out = pl.pallas_call(
        dropout_fc_kernel,
        out_shape=jax.ShapeDtypeStruct((B_pad, N_PAD), jnp.float32),
        grid=grid,
        in_specs=[
            pl.BlockSpec((TM, IN_FEATURES), lambda i: (i, 0)),     # x tile
            pl.BlockSpec((N_PAD, IN_FEATURES), lambda i: (0, 0)),  # weight (resident)
            pl.BlockSpec((1, N_PAD), lambda i: (0, 0)),            # bias (resident)
            pl.BlockSpec((TM, N_PAD), lambda i: (i, 0)),           # random bits tile
        ],
        out_specs=pl.BlockSpec((TM, N_PAD), lambda i: (i, 0)),
        compiler_params=pltpu.CompilerParams(
            dimension_semantics=("parallel",)),
    )(xb, w_pad, b_pad, bits)

    out = out[:B, :OUT_FEATURES]
    return out[0] if squeeze else out


if __name__ == "__main__":
    key = jax.random.PRNGKey(0)
    k_x, k_w, k_b, k_drop = jax.random.split(key, 4)

    # Deterministic "parameters" (shapes from nn.Linear(100, 20)).
    bound = 1.0 / (IN_FEATURES ** 0.5)
    weight = jax.random.uniform(k_w, (OUT_FEATURES, IN_FEATURES),
                                minval=-bound, maxval=bound, dtype=jnp.float32)
    bias = jax.random.uniform(k_b, (OUT_FEATURES,),
                              minval=-bound, maxval=bound, dtype=jnp.float32)

    # Example input (torch.randn(100) analogue).
    x = jax.random.normal(k_x, (IN_FEATURES,), dtype=jnp.float32)

    out = dropout_fc(x, weight, bias, key=k_drop)
    out = jax.block_until_ready(out)

    assert out.shape == (OUT_FEATURES,)
    assert out.dtype == jnp.float32

    # Reference check: same mask (derived from the same bits), same math.
    B_pad = _round_up(1, min(TM_MAX, _round_up(1, 8)))
    bits_ref = jax.random.bits(k_drop, (B_pad, N_PAD), dtype=jnp.uint32)
    keep_ref = bits_ref[:1, :OUT_FEATURES] >= jnp.uint32(KEEP_THRESHOLD)
    y_ref = x @ weight.T + bias
    expected = jnp.where(keep_ref[0], y_ref / (1.0 - DROP_P), 0.0)
    assert jnp.allclose(out, expected, rtol=1e-3, atol=1e-3)

    print("KERNEL_OK")
</pallas_src>

<mosaic_0001>
module attributes {stable_mosaic.version = 11 : i64} {
  func.func @dropout_fc_kernel(%arg0: i32, %arg1: memref<8x100xf32, #tpu.memory_space<vmem>>, %arg2: memref<128x100xf32, #tpu.memory_space<vmem>>, %arg3: memref<1x128xf32, #tpu.memory_space<vmem>>, %arg4: memref<8x128xi32, #tpu.memory_space<vmem>>, %arg5: memref<8x128xf32, #tpu.memory_space<vmem>>) attributes {dimension_semantics = [#tpu.dimension_semantics<parallel>], iteration_bounds = array<i64: 1>, scalar_prefetch = 0 : i64, scratch_operands = 0 : i64, tpu.core_type = #tpu.core_type<tc>, window_params = [{transform_indices = @transform_0, window_bounds = array<i64: 8, 100>}, {pipeline_mode = #tpu.pipeline_mode<synchronous>, transform_indices = @transform_1, window_bounds = array<i64: 128, 100>}, {pipeline_mode = #tpu.pipeline_mode<synchronous>, transform_indices = @transform_2, window_bounds = array<i64: 1, 128>}, {transform_indices = @transform_3, window_bounds = array<i64: 8, 128>}, {transform_indices = @transform_4, window_bounds = array<i64: 8, 128>}]} {
    %c0 = arith.constant 0 : index
    %c0_0 = arith.constant 0 : index
    %0 = vector.load %arg1[%c0, %c0_0] : memref<8x100xf32, #tpu.memory_space<vmem>>, vector<8x100xf32>
    %c0_1 = arith.constant 0 : index
    %c0_2 = arith.constant 0 : index
    %1 = vector.load %arg2[%c0_1, %c0_2] : memref<128x100xf32, #tpu.memory_space<vmem>>, vector<128x100xf32>
    %cst = arith.constant dense<0.000000e+00> : vector<8x128xf32>
    %2 = tpu.matmul %0, %1, %cst {dimension_numbers = #tpu.dot_dimension_numbers<[1], [1], [0], [0], [0, 0, 1, 0], [], []>} : vector<8x100xf32>, vector<128x100xf32>, vector<8x128xf32> -> vector<8x128xf32>
    %c0_3 = arith.constant 0 : index
    %c0_4 = arith.constant 0 : index
    %3 = vector.load %arg3[%c0_3, %c0_4] : memref<1x128xf32, #tpu.memory_space<vmem>>, vector<1x128xf32>
    %4 = vector.broadcast %3 : vector<1x128xf32> to vector<8x128xf32>
    %5 = arith.addf %2, %4 : vector<8x128xf32>
    %c0_5 = arith.constant 0 : index
    %c0_6 = arith.constant 0 : index
    %6 = vector.load %arg4[%c0_5, %c0_6] : memref<8x128xi32, #tpu.memory_space<vmem>>, vector<8x128xi32>
    %c-2147483648_i32 = arith.constant -2147483648 : i32
    %7 = vector.broadcast %c-2147483648_i32 : i32 to vector<8x128xi32>
    %8 = arith.cmpi uge, %6, %7 : vector<8x128xi32>
    %cst_7 = arith.constant 0.000000e+00 : f32
    %9 = vector.broadcast %cst_7 : f32 to vector<8x128xf32>
    %10 = arith.select %8, %5, %9 : vector<8x128xi1>, vector<8x128xf32>
    %c0_8 = arith.constant 0 : index
    %c0_9 = arith.constant 0 : index
    %11 = vector.load %arg5[%c0_8, %c0_9] : memref<8x128xf32, #tpu.memory_space<vmem>>, vector<8x128xf32>
    tpu.vector_store %arg5[%c0_8, %c0_9], %10 {strides = array<i32>} : memref<8x128xf32, #tpu.memory_space<vmem>>, vector<8x128xf32>,
    return
  }
  func.func @transform_0(%arg0: i32) -> (i32, i32) {
    %c0_i32 = arith.constant 0 : i32
    %c0_i32_0 = arith.constant 0 : i32
    return %arg0, %c0_i32 : i32, i32
  }
  func.func @transform_1(%arg0: i32) -> (i32, i32) {
    %c0_i32 = arith.constant 0 : i32
    %c0_i32_0 = arith.constant 0 : i32
    %c0_i32_1 = arith.constant 0 : i32
    return %c0_i32, %c0_i32_0 : i32, i32
  }
  func.func @transform_2(%arg0: i32) -> (i32, i32) {
    %c0_i32 = arith.constant 0 : i32
    %c0_i32_0 = arith.constant 0 : i32
    %c0_i32_1 = arith.constant 0 : i32
    return %c0_i32, %c0_i32_0 : i32, i32
  }
  func.func @transform_3(%arg0: i32) -> (i32, i32) {
    %c0_i32 = arith.constant 0 : i32
    %c0_i32_0 = arith.constant 0 : i32
    return %arg0, %c0_i32 : i32, i32
  }
  func.func @transform_4(%arg0: i32) -> (i32, i32) {
    %c0_i32 = arith.constant 0 : i32
    %c0_i32_0 = arith.constant 0 : i32
    return %arg0, %c0_i32 : i32, i32
  }
}

</mosaic_0001>

<bundles_post_ra>
// kernel: tpu_custom_call.1
= control target key start
LH: loop header
LB: loop body
LE: loop exit
PB: predicated region body
PF: predicated region fallthrough
CT: control target
= control target key end

     0   :  { %vm42_vm0 = vcmask 818176   ;;  %v312_v2 = vmov 0.0|0.0   ;;  %vm313_vm2 = vmmov 0   ;;  %v314_v5 = vmov 0.0   ;;  %s433_s0 = inlined_call_operand.vmem [shape: f32[8,100], index: 0, kind: input, shape index: {}]   ;;  %s434_s1 = inlined_call_operand.vmem [shape: f32[128,100], index: 1, kind: input, shape index: {}]   ;;  %s435_s2 = inlined_call_operand.vmem [shape: f32[1,128], index: 2, kind: input, shape index: {}]   ;;  %s436_s3 = inlined_call_operand.vmem [shape: u32[8,128], index: 3, kind: input, shape index: {}]   ;;  %s437_s4 = inlined_call_operand.hbm [shape: f32[8,128], index: 4, kind: output, shape index: {}]  }
   0x1   :  { %v19_v0 = vld [vmem:[%s434_s1] sm:$0xff]  ;;  %v20_v1 = vld [vmem:[%s434_s1 + $0x8] sm:$0xff]  ;;  %252 = vmatprep.subr.bf16.mxu0 %v312_v2  ;;  %vm349_vm1 = vmpackc.low %vm42_vm0, %vm42_vm0  ;;  %249 = vmatprep.mubr.msk.f32.mxu0 %vm313_vm2, %v314_v5 }
   0x2   :  { %v253_v3 = vpack.c.bf16 %v20_v1, %v19_v0  ;;  %v21_v6 = vld [vmem:[%s434_s1 + $0x10] sm:$0xff]  ;;  %v22_v7 = vld [vmem:[%s434_s1 + $0x18] sm:$0xff] }
   0x4   :  { %255 = vmatpush3.bf16.xpose.msk.msra.mxu0 %vm349_vm1, %v253_v3 }
   0x5   :  { %256 = vmatprep.subr.bf16.mxu0 %v312_v2 }
   0x6   :  { %9 = vsyncpa [#allocation3], 0  ;;  %v257_v8 = vpack.c.bf16 %v22_v7, %v21_v6  ;;  %v23_v9 = vld [vmem:[%s434_s1 + $0x20] sm:$0xff]  ;;  %v24_v10 = vld [vmem:[%s434_s1 + $0x28] sm:$0xff]  ;;  %s315_s27 = smov [#allocation2]  }
   0x7   :  { %v261_v11 = vpack.c.bf16 %v24_v10, %v23_v9  ;;  %v25_v12 = vld [vmem:[%s434_s1 + $0x30] sm:$0xff]  ;;  %v26_v13 = vld [vmem:[%s434_s1 + $0x38] sm:$0xff]  ;;  %v27_v15 = vld [vmem:[%s434_s1 + $0x40] sm:$0xff] }
   0x8   :  { %v265_v14 = vpack.c.bf16 %v26_v13, %v25_v12  ;;  %v28_v16 = vld [vmem:[%s434_s1 + $0x48] sm:$0xff]  ;;  %v29_v18 = vld [vmem:[%s434_s1 + $0x50] sm:$0xff]  ;;  %v30_v19 = vld [vmem:[%s434_s1 + $0x58] sm:$0xff] }
   0x9   :  { %v269_v17 = vpack.c.bf16 %v28_v16, %v27_v15  ;;  %v273_v20 = vpack.c.bf16 %v30_v19, %v29_v18  ;;  %v31_v21 = vld [vmem:[%s434_s1 + $0x60] sm:$0xff]  ;;  %v32_v22 = vld [vmem:[%s434_s1 + $0x68] sm:$0xff]  ;;  %v33_v24 = vld [vmem:[%s434_s1 + $0x70] sm:$0xff] }
   0xa   :  { %v277_v23 = vpack.c.bf16 %v32_v22, %v31_v21  ;;  %v34_v25 = vld [vmem:[%s434_s1 + $0x78] sm:$0xff]  ;;  %v18_v27 = vld [vmem:[%s433_s0] sm:$0xff]  ;;  %s174_s1 = sshll.u32 %s315_s27, 4  ;;  %s175_s1 = int_to_ptr.vmem [resolvable:$true] %s174_s1 }
   0xb   :  { %v281_v26 = vpack.c.bf16 %v34_v25, %v33_v24  ;;  %v164_v28 = vld [vmem:[%s436_s3] sm:$0xff]  ;;  %s288_s0 = scalar_lea.vmem %s175_s1, 128  ;;  %p293_p1 = scmp.lt.s32.totalorder %s175_s1, %s175_s1 }
   0xc   :  { %259 = vmatpush3.bf16.xpose.msk.msra.mxu0 %vm349_vm1, %v257_v8  ;;  %v182_v29 = vld [vmem:[%s435_s2] ss:$0 sm:$0xff]  ;;  %vm165_vm3 = vcmp.ge.u32.totalorder %v164_v28, 2147483648  ;;  %p289_p0 = scmp.ne.s32.totalorder %s175_s1, %s288_s0  ;;  %p294_p2 = scmp.lt.s32.totalorder %s288_s0, %s288_s0 }
   0xd   :  { %260 = vmatprep.subr.bf16.mxu0 %v312_v2 }
   0xe   :  { %p295_p3 = por %p294_p2, %p293_p1 }
  0x10   :  { %p296_p4 = pnand %p295_p3, %p289_p0 }
  0x14   :  { %263 = vmatpush3.bf16.xpose.msk.msra.mxu0 %vm349_vm1, %v261_v11 }
  0x15   :  { %264 = vmatprep.subr.bf16.mxu0 %v312_v2 }
  0x1c   :  { %267 = vmatpush3.bf16.xpose.msk.msra.mxu0 %vm349_vm1, %v265_v14 }
  0x1d   :  { %268 = vmatprep.subr.bf16.mxu0 %v312_v2 }
  0x24   :  { %271 = vmatpush3.bf16.xpose.msk.msra.mxu0 %vm349_vm1, %v269_v17 }
  0x25   :  { %272 = vmatprep.subr.bf16.mxu0 %v312_v2 }
  0x2c   :  { %275 = vmatpush3.bf16.xpose.msk.msra.mxu0 %vm349_vm1, %v273_v20 }
  0x2d   :  { %276 = vmatprep.subr.bf16.mxu0 %v312_v2 }
  0x34   :  { %279 = vmatpush3.bf16.xpose.msk.msra.mxu0 %vm349_vm1, %v277_v23 }
  0x35   :  { %280 = vmatprep.subr.bf16.mxu0 %v312_v2 }
  0x3c   :  { %283 = vmatpush3.bf16.xpose.msk.msra.mxu0 %vm349_vm1, %v281_v26 }
  0x43   :  { %250 = vmatmul.mubr.msk.f32.vlgmr.msra.gmra.mrb[0].mxu0 %vm42_vm0, %v18_v27 }
 0x116   :  { %v160_v30 = vpop.f32.mrb[0].mxu0 }
 0x117   :  { %v161_v31 = vadd.f32 %v182_v29, %v160_v30  ;;  %v251_v32 = vpop.f32.mrb[1].mxu0 }
 0x119   :  { %v166_v33 = vsel %vm165_vm3, %v161_v31, 0.0 }
 0x11a   :  { %167 = vst [vmem:[#allocation2] sm:$0xff] %v166_v33 }
 0x11b   :  { %299 = shalt.err (!%p296_p4)
}
 0x11c   :  { %s300_s2 = scalar_lea.hbm %s437_s4, 128 }
 0x11d   :  { %p301_p5 = scmp.ne.s32.totalorder %s437_s4, %s300_s2  ;;  %p304_p6 = scmp.lt.u32.totalorder %s300_s2, %s437_s4 }
 0x11f   :  { %p306_p7 = pnand %p304_p6, %p301_p5 }
 0x121   :  { %309 = shalt.err (!%p306_p7)
}
 0x122   :  { %177 = dma.vmem_to_hbm [thread:$0]  %s175_s1, 128, %s437_s4, [#allocation3]  }
 0x123   :  { %310 = dma.done.wait [#allocation3], 128  }
 0x124   :  { %311 = vsyncadd [#allocation3], 4294967168 }
 0x125   :  { %181 = vsyncpa [#allocation3], 1 }

</bundles_post_ra>
